<compile_context>
chip_gen: v6e
topology: v6e:2x2x1
jax: 0.10.0
libtpu: 0.0.40
codegen_flags: <defaults>
</compile_context>

<pallas_src>
import functools

import jax
import jax.numpy as jnp
import numpy as np
from jax.experimental import pallas as pl
from jax.experimental.pallas import tpu as pltpu


def _round_up(x, m):
    return ((x + m - 1) // m) * m


def inverse_block_kernel(action_ref, state_ref, slab_ref, out_ref,
                         *, trained_dim, hidden, offsets):
    o_w1a, o_w1s, o_w2, o_w3s, o_w3t, o_b = offsets
    action = action_ref[...]                              # (Bt, A)
    state = state_ref[...]                                # (Bt, S)
    A = action.shape[1]
    S = state.shape[1]
    H2 = 2 * hidden

    # Static, sublane-aligned views into the single packed weight slab (LW lanes).
    w1a = slab_ref[pl.ds(o_w1a, A), :]                    # (A,  LW)  rows [Dt:A) are zero
    w1s = slab_ref[pl.ds(o_w1s, S), :]                    # (S,  LW)
    w2 = slab_ref[pl.ds(o_w2, H2), :]                     # (H2, LW)  block-diag(s_w2, t_w2)
    w3s = slab_ref[pl.ds(o_w3s, H2), :]                   # (H2, LW)  SBlock out -> lanes [Dt:A)
    w3t = slab_ref[pl.ds(o_w3t, H2), :]                   # (H2, LW)  TBlock out -> lanes [Dt:A)
    b1 = slab_ref[pl.ds(o_b + 0, 1), :]                   # (1, LW)
    b2 = slab_ref[pl.ds(o_b + 1, 1), :]
    b3s = slab_ref[pl.ds(o_b + 2, 1), :]
    b3t = slab_ref[pl.ds(o_b + 3, 1), :]

    relu = lambda v: jnp.maximum(v, 0.0)
    dot = functools.partial(jnp.dot, preferred_element_type=jnp.float32)

    # Layer 1: dot(action, w1a) + dot(state, w1s) == concat([trained, state]) @ [s_w1|t_w1]
    # (not-trained columns of `action` hit zero rows of w1a).
    h = relu(dot(action, w1a) + dot(state, w1s) + b1)     # (Bt, LW), live cols [0:H2)
    # Layer 2: block-diagonal fused S/T hidden layer.
    h = relu(dot(h[:, :H2], w2) + b2)                     # (Bt, LW), live cols [0:H2)
    hh = h[:, :H2]
    # Layer 3: S and T outputs land directly under the not-trained lanes [Dt:A).
    e = relu(dot(hh, w3s) + b3s)                          # exp_part at lanes [Dt:A), else 0
    t = relu(dot(hh, w3t) + b3t)                          # lin_part at lanes [Dt:A), else 0

    # Epilogue: lane-select instead of concat. At trained lanes e=t=0, but the select
    # keeps the pass-through exact.
    lane = jax.lax.broadcasted_iota(jnp.int32, action.shape, 1)
    coupled = action * jnp.exp(e[:, :A]) + t[:, :A]
    out_ref[...] = jnp.where(lane < trained_dim, action, coupled).astype(out_ref.dtype)


def pack_params(params, trained_dim, state_dim, hidden, out_dim):
    """Pack both 3-layer MLPs (S/T) into ONE zero-padded f32 slab (host-side, once)."""
    A = trained_dim + out_dim
    H2 = 2 * hidden
    LW = _round_up(max(H2, A), 128)                       # lane-pad to 128
    Apad = _round_up(max(A, 1), 8)                        # sublane-pad to 8
    Spad = _round_up(max(state_dim, 1), 8)
    Hpad = _round_up(H2, 8)

    o_w1a = 0
    o_w1s = o_w1a + Apad
    o_w2 = o_w1s + Spad
    o_w3s = o_w2 + Hpad
    o_w3t = o_w3s + Hpad
    o_b = o_w3t + Hpad
    rows = o_b + 8

    g = lambda k: np.asarray(params[k], np.float32)
    slab = np.zeros((rows, LW), np.float32)

    # Layer 1: columns [0:H2) hold [S | T]. Only the first trained_dim rows of the
    # action segment are populated -> kernel needs no slice/concat of `action`.
    w1 = np.concatenate([g("s_w1"), g("t_w1")], axis=1)   # (Dt + S, H2)
    slab[o_w1a:o_w1a + trained_dim, :H2] = w1[:trained_dim]
    slab[o_w1s:o_w1s + state_dim, :H2] = w1[trained_dim:]

    # Layer 2: block-diag(s_w2, t_w2) in columns [0:H2).
    slab[o_w2:o_w2 + hidden, :hidden] = g("s_w2")
    slab[o_w2 + hidden:o_w2 + H2, hidden:H2] = g("t_w2")

    # Layer 3: S and T outputs are written straight into output lanes [Dt:A).
    slab[o_w3s:o_w3s + hidden, trained_dim:A] = g("s_w3")
    slab[o_w3t + hidden:o_w3t + H2, trained_dim:A] = g("t_w3")

    # Biases (one sublane row each).
    slab[o_b + 0, :H2] = np.concatenate([g("s_b1"), g("t_b1")])
    slab[o_b + 1, :H2] = np.concatenate([g("s_b2"), g("t_b2")])
    slab[o_b + 2, trained_dim:A] = g("s_b3")
    slab[o_b + 3, trained_dim:A] = g("t_b3")

    return {"slab": jnp.asarray(slab),
            "offsets": (o_w1a, o_w1s, o_w2, o_w3s, o_w3t, o_b)}


def _choose_batch_tile(B, tile_b):
    if B <= tile_b:
        return B                                          # single grid step
    n_steps = pl.cdiv(B, tile_b)
    if n_steps % 2:
        n_steps += 1                                      # even #steps -> v7x dual-TC sharding
    return _round_up(pl.cdiv(B, n_steps), 8)


def inverse_block_forward(action, state, packed, trained_dim, hidden, *,
                          tile_b=4096, donate_action=False):
    """Pallas-backed forward: concat([trained, not_trained*exp(s)+t], axis=1)."""
    B, A = action.shape
    S = state.shape[1]
    slab = packed["slab"]
    offsets = packed["offsets"]
    LW = slab.shape[1]
    H2 = 2 * hidden

    Bt = _choose_batch_tile(B, tile_b)
    grid = (pl.cdiv(B, Bt),)

    kernel = functools.partial(inverse_block_kernel, trained_dim=trained_dim,
                               hidden=hidden, offsets=offsets)

    flops = 2 * B * LW * (A + S + 3 * H2)
    bytes_accessed = 4 * (2 * B * A + B * S + slab.size)

    return pl.pallas_call(
        kernel,
        out_shape=jax.ShapeDtypeStruct((B, A), jnp.float32),
        grid_spec=pltpu.PrefetchScalarGridSpec(
            num_scalar_prefetch=0,
            grid=grid,
            in_specs=[
                pl.BlockSpec((Bt, A), lambda i: (i, 0)),          # action
                pl.BlockSpec((Bt, S), lambda i: (i, 0)),          # state
                pl.BlockSpec(slab.shape, lambda i: (0, 0)),       # weight slab (grid-invariant)
            ],
            out_specs=pl.BlockSpec((Bt, A), lambda i: (i, 0)),
        ),
        compiler_params=pltpu.CompilerParams(
            dimension_semantics=("parallel",)),
        cost_estimate=pl.CostEstimate(
            flops=int(flops),
            transcendentals=int(B * A),
            bytes_accessed=int(bytes_accessed)),
        input_output_aliases=({0: 0} if donate_action else {}),
    )(action, state, slab)


def _make_params(key, trained_dim, state_dim, hidden, out_dim):
    """Deterministic init of the two 3-layer MLPs (SBlock / TBlock)."""
    d_in = trained_dim + state_dim
    keys = jax.random.split(key, 12)

    def lin(k, fi, fo):
        return (1.0 / np.sqrt(fi)) * jax.random.normal(k, (fi, fo), dtype=jnp.float32)

    def bias(k, fo):
        return 0.01 * jax.random.normal(k, (fo,), dtype=jnp.float32)

    return {
        # SBlock: (d_in -> hidden -> hidden -> out_dim), ReLU after each layer
        "s_w1": lin(keys[0], d_in, hidden), "s_b1": bias(keys[1], hidden),
        "s_w2": lin(keys[2], hidden, hidden), "s_b2": bias(keys[3], hidden),
        "s_w3": lin(keys[4], hidden, out_dim), "s_b3": bias(keys[5], out_dim),
        # TBlock
        "t_w1": lin(keys[6], d_in, hidden), "t_b1": bias(keys[7], hidden),
        "t_w2": lin(keys[8], hidden, hidden), "t_b2": bias(keys[9], hidden),
        "t_w3": lin(keys[10], hidden, out_dim), "t_b3": bias(keys[11], out_dim),
    }


def _reference_forward(action, state, params, trained_dim):
    """Pure-JAX reference mirroring the PyTorch forward (unfused weights)."""
    trained = action[:, :trained_dim]
    not_trained = action[:, trained_dim:]
    x = jnp.concatenate([trained, state], axis=1)

    def mlp(pre):
        h = jax.nn.relu(x @ params[pre + "w1"] + params[pre + "b1"])
        h = jax.nn.relu(h @ params[pre + "w2"] + params[pre + "b2"])
        h = jax.nn.relu(h @ params[pre + "w3"] + params[pre + "b3"])
        return h

    exp_part = mlp("s_")   # note: ReLU is applied after the final layer, as in the module
    lin_part = mlp("t_")
    return jnp.concatenate([trained, not_trained * jnp.exp(exp_part) + lin_part], axis=1)


if __name__ == "__main__":
    # Small shapes consistent with the module:
    #   action_dim = 8, not_trained_action = 4 -> trained_dim = 4
    #   state_dim = 16, hidden = 32, batch = 8
    B, action_dim, not_trained_dim, state_dim, hidden = 8, 8, 4, 16, 32
    trained_dim = action_dim - not_trained_dim

    root = jax.random.PRNGKey(0)
    k_act, k_state, k_params = jax.random.split(root, 3)

    action = jax.random.normal(k_act, (B, action_dim), dtype=jnp.float32)
    state = jax.random.normal(k_state, (B, state_dim), dtype=jnp.float32)
    params = _make_params(k_params, trained_dim, state_dim, hidden, not_trained_dim)
    packed = pack_params(params, trained_dim, state_dim, hidden, not_trained_dim)

    out = inverse_block_forward(action, state, packed, trained_dim, hidden)
    out = jax.block_until_ready(out)

    ref = jax.block_until_ready(_reference_forward(action, state, params, trained_dim))
    np.testing.assert_allclose(np.asarray(out), np.asarray(ref), rtol=2e-5, atol=2e-5)

    print("KERNEL_OK")
</pallas_src>

<mosaic_0001>
module attributes {stable_mosaic.version = 11 : i64} {
  func.func @inverse_block_kernel(%arg0: i32, %arg1: memref<8x8xf32, #tpu.memory_space<vmem>>, %arg2: memref<8x16xf32, #tpu.memory_space<vmem>>, %arg3: memref<224x128xf32, #tpu.memory_space<vmem>>, %arg4: memref<8x8xf32, #tpu.memory_space<vmem>>) attributes {dimension_semantics = [#tpu.dimension_semantics<parallel>], iteration_bounds = array<i64: 1>, scalar_prefetch = 0 : i64, scratch_operands = 0 : i64, tpu.core_type = #tpu.core_type<tc>, window_params = [{transform_indices = @transform_0, window_bounds = array<i64: 8, 8>}, {transform_indices = @transform_1, window_bounds = array<i64: 8, 16>}, {pipeline_mode = #tpu.pipeline_mode<synchronous>, transform_indices = @transform_2, window_bounds = array<i64: 224, 128>}, {transform_indices = @transform_3, window_bounds = array<i64: 8, 8>}]} {
    %c0 = arith.constant 0 : index
    %c0_0 = arith.constant 0 : index
    %0 = vector.load %arg1[%c0, %c0_0] : memref<8x8xf32, #tpu.memory_space<vmem>>, vector<8x8xf32>
    %c0_1 = arith.constant 0 : index
    %c0_2 = arith.constant 0 : index
    %1 = vector.load %arg2[%c0_1, %c0_2] : memref<8x16xf32, #tpu.memory_space<vmem>>, vector<8x16xf32>
    %c0_3 = arith.constant 0 : index
    %c0_4 = arith.constant 0 : index
    %2 = vector.load %arg3[%c0_3, %c0_4] : memref<224x128xf32, #tpu.memory_space<vmem>>, vector<8x128xf32>
    %c8 = arith.constant 8 : index
    %c0_5 = arith.constant 0 : index
    %3 = vector.load %arg3[%c8, %c0_5] : memref<224x128xf32, #tpu.memory_space<vmem>>, vector<16x128xf32>
    %c24 = arith.constant 24 : index
    %c0_6 = arith.constant 0 : index
    %4 = vector.load %arg3[%c24, %c0_6] : memref<224x128xf32, #tpu.memory_space<vmem>>, vector<64x128xf32>
    %c88 = arith.constant 88 : index
    %c0_7 = arith.constant 0 : index
    %5 = vector.load %arg3[%c88, %c0_7] : memref<224x128xf32, #tpu.memory_space<vmem>>, vector<64x128xf32>
    %c152 = arith.constant 152 : index
    %c0_8 = arith.constant 0 : index
    %6 = vector.load %arg3[%c152, %c0_8] : memref<224x128xf32, #tpu.memory_space<vmem>>, vector<64x128xf32>
    %c216 = arith.constant 216 : index
    %c0_9 = arith.constant 0 : index
    %7 = vector.load %arg3[%c216, %c0_9] : memref<224x128xf32, #tpu.memory_space<vmem>>, vector<1x128xf32>
    %c217 = arith.constant 217 : index
    %c0_10 = arith.constant 0 : index
    %8 = vector.load %arg3[%c217, %c0_10] : memref<224x128xf32, #tpu.memory_space<vmem>>, vector<1x128xf32>
    %c218 = arith.constant 218 : index
    %c0_11 = arith.constant 0 : index
    %9 = vector.load %arg3[%c218, %c0_11] : memref<224x128xf32, #tpu.memory_space<vmem>>, vector<1x128xf32>
    %c219 = arith.constant 219 : index
    %c0_12 = arith.constant 0 : index
    %10 = vector.load %arg3[%c219, %c0_12] : memref<224x128xf32, #tpu.memory_space<vmem>>, vector<1x128xf32>
    %cst = arith.constant dense<0.000000e+00> : vector<8x128xf32>
    %11 = tpu.matmul %0, %2, %cst {dimension_numbers = #tpu.dot_dimension_numbers<[1], [0], [0], [1], [0, 0, 1, 1], [], []>} : vector<8x8xf32>, vector<8x128xf32>, vector<8x128xf32> -> vector<8x128xf32>
    %cst_13 = arith.constant dense<0.000000e+00> : vector<8x128xf32>
    %12 = tpu.matmul %1, %3, %cst_13 {dimension_numbers = #tpu.dot_dimension_numbers<[1], [0], [0], [1], [0, 0, 1, 1], [], []>} : vector<8x16xf32>, vector<16x128xf32>, vector<8x128xf32> -> vector<8x128xf32>
    %13 = arith.addf %11, %12 : vector<8x128xf32>
    %14 = vector.broadcast %7 : vector<1x128xf32> to vector<8x128xf32>
    %15 = arith.addf %13, %14 : vector<8x128xf32>
    %cst_14 = arith.constant 0.000000e+00 : f32
    %16 = vector.broadcast %cst_14 : f32 to vector<8x128xf32>
    %17 = arith.maximumf %15, %16 : vector<8x128xf32>
    %18 = vector.extract_strided_slice %17 {offsets = [0, 0], sizes = [8, 64], strides = [1, 1]} : vector<8x128xf32> to vector<8x64xf32>
    %cst_15 = arith.constant dense<0.000000e+00> : vector<8x128xf32>
    %19 = tpu.matmul %18, %4, %cst_15 {dimension_numbers = #tpu.dot_dimension_numbers<[1], [0], [0], [1], [0, 0, 1, 1], [], []>} : vector<8x64xf32>, vector<64x128xf32>, vector<8x128xf32> -> vector<8x128xf32>
    %20 = vector.broadcast %8 : vector<1x128xf32> to vector<8x128xf32>
    %21 = arith.addf %19, %20 : vector<8x128xf32>
    %cst_16 = arith.constant 0.000000e+00 : f32
    %22 = vector.broadcast %cst_16 : f32 to vector<8x128xf32>
    %23 = arith.maximumf %21, %22 : vector<8x128xf32>
    %24 = vector.extract_strided_slice %23 {offsets = [0, 0], sizes = [8, 64], strides = [1, 1]} : vector<8x128xf32> to vector<8x64xf32>
    %cst_17 = arith.constant dense<0.000000e+00> : vector<8x128xf32>
    %25 = tpu.matmul %24, %5, %cst_17 {dimension_numbers = #tpu.dot_dimension_numbers<[1], [0], [0], [1], [0, 0, 1, 1], [], []>} : vector<8x64xf32>, vector<64x128xf32>, vector<8x128xf32> -> vector<8x128xf32>
    %26 = vector.broadcast %9 : vector<1x128xf32> to vector<8x128xf32>
    %27 = arith.addf %25, %26 : vector<8x128xf32>
    %cst_18 = arith.constant 0.000000e+00 : f32
    %28 = vector.broadcast %cst_18 : f32 to vector<8x128xf32>
    %29 = arith.maximumf %27, %28 : vector<8x128xf32>
    %cst_19 = arith.constant dense<0.000000e+00> : vector<8x128xf32>
    %30 = tpu.matmul %24, %6, %cst_19 {dimension_numbers = #tpu.dot_dimension_numbers<[1], [0], [0], [1], [0, 0, 1, 1], [], []>} : vector<8x64xf32>, vector<64x128xf32>, vector<8x128xf32> -> vector<8x128xf32>
    %31 = vector.broadcast %10 : vector<1x128xf32> to vector<8x128xf32>
    %32 = arith.addf %30, %31 : vector<8x128xf32>
    %cst_20 = arith.constant 0.000000e+00 : f32
    %33 = vector.broadcast %cst_20 : f32 to vector<8x128xf32>
    %34 = arith.maximumf %32, %33 : vector<8x128xf32>
    %35 = tpu.iota {dimensions = array<i32: 1>} : vector<8x8xi32>
    %36 = vector.extract_strided_slice %29 {offsets = [0, 0], sizes = [8, 8], strides = [1, 1]} : vector<8x128xf32> to vector<8x8xf32>
    %37 = math.exp %36 : vector<8x8xf32>
    %38 = arith.mulf %0, %37 : vector<8x8xf32>
    %39 = vector.extract_strided_slice %34 {offsets = [0, 0], sizes = [8, 8], strides = [1, 1]} : vector<8x128xf32> to vector<8x8xf32>
    %40 = arith.addf %38, %39 : vector<8x8xf32>
    %c4_i32 = arith.constant 4 : i32
    %41 = vector.broadcast %c4_i32 : i32 to vector<8x8xi32>
    %42 = arith.cmpi slt, %35, %41 : vector<8x8xi32>
    %43 = arith.select %42, %0, %40 : vector<8x8xi1>, vector<8x8xf32>
    %c0_21 = arith.constant 0 : index
    %c0_22 = arith.constant 0 : index
    %44 = vector.load %arg4[%c0_21, %c0_22] : memref<8x8xf32, #tpu.memory_space<vmem>>, vector<8x8xf32>
    tpu.vector_store %arg4[%c0_21, %c0_22], %43 {strides = array<i32>} : memref<8x8xf32, #tpu.memory_space<vmem>>, vector<8x8xf32>,
    return
  }
  func.func @transform_0(%arg0: i32) -> (i32, i32) {
    %c0_i32 = arith.constant 0 : i32
    %c0_i32_0 = arith.constant 0 : i32
    return %arg0, %c0_i32 : i32, i32
  }
  func.func @transform_1(%arg0: i32) -> (i32, i32) {
    %c0_i32 = arith.constant 0 : i32
    %c0_i32_0 = arith.constant 0 : i32
    return %arg0, %c0_i32 : i32, i32
  }
  func.func @transform_2(%arg0: i32) -> (i32, i32) {
    %c0_i32 = arith.constant 0 : i32
    %c0_i32_0 = arith.constant 0 : i32
    %c0_i32_1 = arith.constant 0 : i32
    return %c0_i32, %c0_i32_0 : i32, i32
  }
  func.func @transform_3(%arg0: i32) -> (i32, i32) {
    %c0_i32 = arith.constant 0 : i32
    %c0_i32_0 = arith.constant 0 : i32
    return %arg0, %c0_i32 : i32, i32
  }
}

</mosaic_0001>

<bundles_post_ra>
// kernel: tpu_custom_call.1
= control target key start
LH: loop header
LB: loop body
LE: loop exit
PB: predicated region body
PF: predicated region fallthrough
CT: control target
= control target key end

     0   :  { %8 = vsyncpa [#allocation3], 0  ;;  %s789_s0 = inlined_call_operand.hbm [shape: f32[8,8], index: 0, kind: input, shape index: {}]   ;;  %s790_s1 = inlined_call_operand.hbm [shape: f32[8,16], index: 1, kind: input, shape index: {}]   ;;  %s791_s2 = inlined_call_operand.hbm [shape: f32[224,128], index: 2, kind: input, shape index: {}]   ;;  %s792_s3 = inlined_call_operand.hbm [shape: f32[8,8], index: 3, kind: output, shape index: {}]  }
   0x1   :  { %9 = vsyncpa [#allocation6], 0 }
   0x2   :  { %10 = vsyncpa [#allocation4], 0  ;;  %s702_s12 = smov [#allocation5]   ;;  %s703_s14 = smov [#allocation2]  }
   0x3   :  { %s27_s13 = sshll.u32 %s702_s12, 4  ;;  %s17_s15 = sshll.u32 %s703_s14, 4  ;;  %s28_s13 = int_to_ptr.vmem [resolvable:$true] %s27_s13  ;;  %s18_s15 = int_to_ptr.vmem [resolvable:$true] %s17_s15 }
   0x4   :  { %s624_s16 = scalar_lea.vmem %s28_s13, 128  ;;  %p629_p1 = scmp.lt.s32.totalorder %s28_s13, %s28_s13 }
   0x5   :  { %p625_p0 = scmp.ne.s32.totalorder %s28_s13, %s624_s16  ;;  %p630_p2 = scmp.lt.s32.totalorder %s624_s16, %s624_s16 }
   0x7   :  { %p631_p3 = por %p630_p2, %p629_p1 }
   0x9   :  { %p632_p4 = pnand %p631_p3, %p625_p0 }
   0xb   :  { %635 = shalt.err (!%p632_p4)
}
   0xc   :  { %30 = dma.hbm_to_vmem [thread:$0]  %s790_s1, 128, %s28_s13, [#allocation6]  }
   0xd   :  { %s644_s19 = scalar_lea.vmem %s18_s15, 128  ;;  %p649_p6 = scmp.lt.s32.totalorder %s18_s15, %s18_s15 }
   0xe   :  { %p645_p5 = scmp.ne.s32.totalorder %s18_s15, %s644_s19  ;;  %p650_p7 = scmp.lt.s32.totalorder %s644_s19, %s644_s19 }
  0x10   :  { %p651_p8 = por %p650_p7, %p649_p6 }
  0x12   :  { %p652_p9 = pnand %p651_p8, %p645_p5 }
  0x14   :  { %655 = shalt.err (!%p652_p9)
}
  0x15   :  { %20 = dma.hbm_to_vmem [thread:$0]  %s789_s0, 128, %s18_s15, [#allocation3]  }
  0x16   :  { %s704_s22 = smov [#allocation7]  }
  0x17   :  { %s36_s23 = sshll.u32 %s704_s22, 4  ;;  %s37_s23 = int_to_ptr.vmem [resolvable:$true] %s36_s23 }
  0x18   :  { %s664_s24 = scalar_lea.vmem %s37_s23, 3584  ;;  %p669_p11 = scmp.lt.s32.totalorder %s37_s23, %s37_s23 }
  0x19   :  { %p665_p10 = scmp.ne.s32.totalorder %s37_s23, %s664_s24  ;;  %p670_p12 = scmp.lt.s32.totalorder %s664_s24, %s664_s24 }
  0x1b   :  { %p671_p13 = por %p670_p12, %p669_p11 }
  0x1d   :  { %p672_p0 = pnand %p671_p13, %p665_p10 }
  0x1f   :  { %675 = shalt.err (!%p672_p0)
}
  0x20   :  { %s705_s1 = smov 128   ;;  %s706_s25 = smov 8  }
  0x21   :  { %42 = dma.hbm_to_vmem [thread:$0]  %s791_s2, 3584, %s37_s23, [#allocation6], %s705_s1, %s705_s1, %s706_s25  }
  0x22   :  { %696 = dma.done.wait [#allocation3], 128  }
  0x23   :  { %697 = vsyncadd [#allocation3], 4294967168 }
  0x24   :  { %698 = dma.done.wait [#allocation6], 3712  }
  0x25   :  { %699 = vsyncadd [#allocation6], 4294963584  ;;  %v707_v0 = vmov 0.0   ;;  %vm708_vm0 = vmmov 0   ;;  %v56_v1 = vld [vmem:[#allocation7 + $0x10] sm:$0xff]  ;;  %v55_v2 = vld [vmem:[#allocation7 + $0x8] sm:$0xff]  ;;  %v471_v52 = vlaneseq }
  0x26   :  { %537 = vmatprep.subr.mxu0 %v707_v0  ;;  %541 = vmatprep.mubr.msk.f32.mxu0 %vm708_vm0, %v707_v0  ;;  %v53_v3 = vld [vmem:[#allocation5] sm:$0xff]  ;;  %vm85_vm1 = vcmask 130048   ;;  %v64_v4 = vld [vmem:[#allocation7 + $0x50] sm:$0xff]  ;;  %v54_v5 = vld [vmem:[#allocation7] sm:$0xff]  ;;  %vm159_vm2 = vcmask 64512   ;;  %vm243_vm3 = vcmask 523264  }
  0x27   :  { %549 = vmatprep.subr.mxu1 %v707_v0  ;;  %565 = vmatprep.mubr.msk.f32.mxu1 %vm708_vm0, %v707_v0  ;;  %v63_v6 = vld [vmem:[#allocation7 + $0x48] sm:$0xff]  ;;  %v750_v7 = vld [vmem:[#allocation2] sm:$0xff]  ;;  %v62_v8 = vld [vmem:[#allocation7 + $0x40] sm:$0xff]  ;;  %v472_v54 = vand.u32 127, %v471_v52  ;;  %s709_s0 = smov [#allocation8]  }
  0x28   :  { %538 = vmatpush3.msra.mxu0 %v56_v1  ;;  %550 = vmatpush3.msra.mxu1 %v64_v4  ;;  %v61_v9 = vld [vmem:[#allocation7 + $0x38] sm:$0xff]  ;;  %v60_v10 = vld [vmem:[#allocation7 + $0x30] sm:$0xff]  ;;  %v59_v11 = vld [vmem:[#allocation7 + $0x28] sm:$0xff]  ;;  %s486_s2 = sshll.u32 %s709_s0, 4  ;;  %s487_s2 = int_to_ptr.vmem [resolvable:$true] %s486_s2 }
  0x29   :  { %539 = vmatprep.subr.mxu0 %v707_v0  ;;  %551 = vmatprep.subr.mxu1 %v707_v0  ;;  %v58_v12 = vld [vmem:[#allocation7 + $0x20] sm:$0xff]  ;;  %v57_v13 = vld [vmem:[#allocation7 + $0x18] sm:$0xff]  ;;  %v72_v14 = vld [vmem:[#allocation7 + $0x90] sm:$0xff]  ;;  %vm477_vm4 = vcmp.lt.s32.totalorder %v472_v54, 4  ;;  %s676_s28 = scalar_lea.vmem %s487_s2, 128  ;;  %p681_p2 = scmp.lt.s32.totalorder %s487_s2, %s487_s2 }
  0x2a   :  { %540 = vmatpush3.msra.mxu0 %v55_v2  ;;  %552 = vmatpush3.msra.mxu1 %v63_v6  ;;  %v71_v15 = vld [vmem:[#allocation7 + $0x88] sm:$0xff]  ;;  %v70_v16 = vld [vmem:[#allocation7 + $0x80] sm:$0xff]  ;;  %v69_v17 = vld [vmem:[#allocation7 + $0x78] sm:$0xff]  ;;  %p677_p1 = scmp.ne.s32.totalorder %s487_s2, %s676_s28  ;;  %p682_p3 = scmp.lt.s32.totalorder %s676_s28, %s676_s28 }
  0x2b   :  { %542 = vmatmul.mubr.msk.f32.vlgmr.msra.gmra.mxu0 %vm85_vm1, %v53_v3  ;;  %544 = vmatprep.subr.mxu0 %v707_v0  ;;  %v68_v18 = vld [vmem:[#allocation7 + $0x70] sm:$0xff]  ;;  %v498_v21 = vld [vmem:[#allocation7 + $0xd8] ss:$0 sm:$0xff]  ;;  %v79_v28 = vld [vmem:[#allocation7 + $0xc8] sm:$0xff] }
  0x2c   :  { %545 = vmatpush3.msra.mxu0 %v54_v5  ;;  %546 = vmatprep.mubr.msk.f32.mxu0 %vm708_vm0, %v707_v0  ;;  %v80_v27 = vld [vmem:[#allocation7 + $0xd0] sm:$0xff]  ;;  %v78_v29 = vld [vmem:[#allocation7 + $0xc0] sm:$0xff]  ;;  %v77_v30 = vld [vmem:[#allocation7 + $0xb8] sm:$0xff]  ;;  %p683_p4 = por %p682_p3, %p681_p2 }
  0x2d   :  { %568 = vmatprep.subr.mxu0 %v707_v0  ;;  %553 = vmatprep.subr.mxu1 %v707_v0  ;;  %v76_v31 = vld [vmem:[#allocation7 + $0xb0] sm:$0xff]  ;;  %v67_v32 = vld [vmem:[#allocation7 + $0x68] sm:$0xff]  ;;  %v66_v34 = vld [vmem:[#allocation7 + $0x60] sm:$0xff] }
  0x2e   :  { %554 = vmatpush3.msra.mxu1 %v62_v8  ;;  %v75_v33 = vld [vmem:[#allocation7 + $0xa8] sm:$0xff]  ;;  %v74_v35 = vld [vmem:[#allocation7 + $0xa0] sm:$0xff]  ;;  %v65_v36 = vld [vmem:[#allocation7 + $0x58] sm:$0xff]  ;;  %p684_p5 = pnand %p683_p4, %p677_p1 }
  0x2f   :  { %547 = vmatmul.mubr.msk.f32.vlgmr.msra.gmra.mxu0 %vm159_vm2, %v750_v7  ;;  %555 = vmatprep.subr.mxu1 %v707_v0  ;;  %v73_v37 = vld [vmem:[#allocation7 + $0x98] sm:$0xff] }
  0x30   :  { %584 = vmatprep.mubr.msk.f32.mxu0 %vm708_vm0, %v707_v0  ;;  %556 = vmatpush3.msra.mxu1 %v61_v9  ;;  %v499_v38 = vld [vmem:[#allocation7 + $0xd9] ss:$0 sm:$0xff]  ;;  %v501_v43 = vld [vmem:[#allocation7 + $0xda] ss:$0 sm:$0xff]  ;;  %v503_v51 = vld [vmem:[#allocation7 + $0xdb] ss:$0 sm:$0xff] }
  0x31   :  { %557 = vmatprep.subr.mxu1 %v707_v0  ;;  %569 = vmatpush3.msra.mxu0 %v72_v14 }
  0x32   :  { %558 = vmatpush3.msra.mxu1 %v60_v10  ;;  %570 = vmatprep.subr.mxu0 %v707_v0 }
  0x33   :  { %559 = vmatprep.subr.mxu1 %v707_v0  ;;  %571 = vmatpush3.msra.mxu0 %v71_v15 }
  0x34   :  { %560 = vmatpush3.msra.mxu1 %v59_v11  ;;  %572 = vmatprep.subr.mxu0 %v707_v0 }
  0x35   :  { %561 = vmatprep.subr.mxu1 %v707_v0  ;;  %573 = vmatpush3.msra.mxu0 %v70_v16 }
  0x36   :  { %562 = vmatpush3.msra.mxu1 %v58_v12  ;;  %574 = vmatprep.subr.mxu0 %v707_v0 }
  0x37   :  { %563 = vmatprep.subr.mxu1 %v707_v0  ;;  %575 = vmatpush3.msra.mxu0 %v69_v17 }
  0x38   :  { %564 = vmatpush3.msra.mxu1 %v57_v13  ;;  %576 = vmatprep.subr.mxu0 %v707_v0 }
  0x39   :  { %587 = vmatprep.subr.mxu1 %v707_v0  ;;  %577 = vmatpush3.msra.mxu0 %v68_v18 }
  0x3a   :  { %578 = vmatprep.subr.mxu0 %v707_v0 }
  0x3b   :  { %579 = vmatpush3.msra.mxu0 %v67_v32 }
  0x3c   :  { %580 = vmatprep.subr.mxu0 %v707_v0 }
  0x3d   :  { %581 = vmatpush3.msra.mxu0 %v66_v34 }
  0x3e   :  { %582 = vmatprep.subr.mxu0 %v707_v0 }
  0x3f   :  { %583 = vmatpush3.msra.mxu0 %v65_v36 }
  0xeb   :  { %v155_v19 = vpop.f32.mrf.mxu0 }
  0xed   :  { %v543_v20 = vpop.f32.mrf.mxu0 }
  0xef   :  { %v229_v22 = vpop.f32.mrf.mxu0 }
  0xf0   :  { %v230_v23 = vadd.f32 %v229_v22, %v155_v19 }
  0xf1   :  { %v548_v24 = vpop.f32.mrf.mxu0 }
  0xf2   :  { %v237_v25 = vadd.f32 %v498_v21, %v230_v23 }
  0xf4   :  { %v238_v26 = vmax.f32 %v237_v25, 0.0 }
  0xf6   :  { %566 = vmatmul.mubr.msk.f32.vlgmr.msra.gmra.mxu1 %vm243_vm3, %v238_v26 }
  0xf7   :  { %588 = vmatpush3.msra.mxu1 %v80_v27  ;;  %603 = vmatprep.mubr.msk.f32.mxu1 %vm708_vm0, %v707_v0 }
  0xf8   :  { %589 = vmatprep.subr.mxu1 %v707_v0 }
  0xf9   :  { %590 = vmatpush3.msra.mxu1 %v79_v28 }
  0xfa   :  { %591 = vmatprep.subr.mxu1 %v707_v0 }
  0xfb   :  { %592 = vmatpush3.msra.mxu1 %v78_v29 }
  0xfc   :  { %593 = vmatprep.subr.mxu1 %v707_v0 }
  0xfd   :  { %594 = vmatpush3.msra.mxu1 %v77_v30 }
  0xfe   :  { %595 = vmatprep.subr.mxu1 %v707_v0 }
  0xff   :  { %596 = vmatpush3.msra.mxu1 %v76_v31 }
 0x100   :  { %597 = vmatprep.subr.mxu1 %v707_v0 }
 0x101   :  { %598 = vmatpush3.msra.mxu1 %v75_v33 }
 0x102   :  { %599 = vmatprep.subr.mxu1 %v707_v0 }
 0x103   :  { %600 = vmatpush3.msra.mxu1 %v74_v35 }
 0x104   :  { %601 = vmatprep.subr.mxu1 %v707_v0 }
 0x105   :  { %602 = vmatpush3.msra.mxu1 %v73_v37 }
 0x1b6   :  { %v313_v39 = vpop.f32.mrf.mxu1 }
 0x1b7   :  { %v314_v40 = vadd.f32 %v499_v38, %v313_v39 }
 0x1b8   :  { %v567_v41 = vpop.f32.mrf.mxu1 }
 0x1b9   :  { %v317_v42 = vmax.f32 %v314_v40, 0.0 }
 0x1bb   :  { %585 = vmatmul.mubr.msk.f32.vlgmr.msra.gmra.mxu0 %vm243_vm3, %v317_v42  ;;  %604 = vmatmul.mubr.msk.f32.vlgmr.msra.gmra.mxu1 %vm243_vm3, %v317_v42 }
 0x27b   :  { %v391_v44 = vpop.f32.mrf.mxu0  ;;  %v466_v45 = vpop.f32.mrf.mxu1 }
 0x27c   :  { %v392_v46 = vadd.f32 %v501_v43, %v391_v44  ;;  %v467_v53 = vadd.f32 %v503_v51, %v466_v45 }
 0x27d   :  { %v586_v47 = vpop.f32.mrf.mxu0  ;;  %v605_v48 = vpop.f32.mrf.mxu1 }
 0x27e   :  { %v395_v49 = vmax.f32 %v392_v46, 0.0  ;;  %v470_v56 = vmax.f32 %v467_v53, 0.0 }
 0x280   :  { %v473_v50 = vmul.f32 1.442695, %v395_v49 }
 0x282   :  { %614 = vpow2.f32 %v473_v50 }
 0x28f   :  { %v615_v55 = vpop.eup %614 }
 0x290   :  { %v475_v57 = vmul.f32 %v615_v55, %v750_v7 }
 0x292   :  { %v476_v58 = vadd.f32 %v475_v57, %v470_v56 }
 0x294   :  { %v478_v59 = vsel %vm477_vm4, %v750_v7, %v476_v58 }
 0x295   :  { %479 = vst.msk [vmem:[#allocation8] sm:$0xff] %vm159_vm2, %v478_v59 }
 0x296   :  { %687 = shalt.err (!%p684_p5)
}
 0x297   :  { %489 = dma.vmem_to_hbm [thread:$0]  %s487_s2, 128, %s792_s3, [#allocation4]  }
 0x298   :  { %700 = dma.done.wait [#allocation4], 128  }
 0x299   :  { %701 = vsyncadd [#allocation4], 4294967168 }
 0x29a   :  { %493 = vsyncpa [#allocation3], 1 }
 0x29b   :  { %494 = vsyncpa [#allocation6], 1 }
 0x29c   :  { %495 = vsyncpa [#allocation4], 1 }

</bundles_post_ra>
